<compile_context>
chip_gen: v5e
topology: v5e:2x2
jax: 0.10.0
libtpu: 0.0.40
codegen_flags: <defaults>
</compile_context>

<pallas_src>
import jax
import jax.numpy as jnp
from jax.experimental import pallas as pl
from jax.experimental.pallas import tpu as pltpu


def _itemsize(dt):
    return jnp.dtype(dt).itemsize


def _round_down(x, m):
    return (x // m) * m


def _round_up(x, m):
    return ((x + m - 1) // m) * m


def _sublane_multiple(*dtypes):
    # Sub-32-bit dtypes pack along sublanes: 8 rows (f32), 16 (bf16), 32 (int8).
    min_item = min(_itemsize(dt) for dt in dtypes)
    return 8 * max(1, 4 // min_item)


# ---------------------------------------------------------------------------
# Fast path: matched dtypes -> two strided HBM->HBM DMAs, no VMEM staging.
# ---------------------------------------------------------------------------
def _dma_concat_kernel(below_hbm, skip_hbm, out_hbm, sem):
    f1 = below_hbm.shape[-1]
    cp_below = pltpu.make_async_copy(below_hbm, out_hbm.at[:, :f1], sem.at[0])
    cp_skip = pltpu.make_async_copy(skip_hbm, out_hbm.at[:, f1:], sem.at[1])
    cp_below.start()
    cp_skip.start()
    cp_below.wait()
    cp_skip.wait()


def _combine_dma(below2d, skip2d, out_dtype):
    b, f1 = below2d.shape
    _, f2 = skip2d.shape
    fo = f1 + f2
    total_bytes = (below2d.size * _itemsize(below2d.dtype)
                   + skip2d.size * _itemsize(skip2d.dtype)
                   + b * fo * _itemsize(out_dtype))
    return pl.pallas_call(
        _dma_concat_kernel,
        out_shape=jax.ShapeDtypeStruct((b, fo), out_dtype),
        in_specs=[pl.BlockSpec(memory_space=pl.ANY),
                  pl.BlockSpec(memory_space=pl.ANY)],
        out_specs=pl.BlockSpec(memory_space=pl.ANY),
        scratch_shapes=[pltpu.SemaphoreType.DMA((2,))],
        cost_estimate=pl.CostEstimate(flops=0, transcendentals=0,
                                      bytes_accessed=int(total_bytes)),
    )(below2d, skip2d)


# ---------------------------------------------------------------------------
# Mixed-dtype path: batch-blocked VMEM staging + VPU cast while copying.
# ---------------------------------------------------------------------------
def _staged_concat_kernel(below_ref, skip_ref, out_ref):
    # below_ref: (bb, F1), skip_ref: (bb, F2), out_ref: (bb, F1 + F2)
    f1 = below_ref.shape[-1]
    out_ref[:, :f1] = below_ref[...].astype(out_ref.dtype)
    out_ref[:, f1:] = skip_ref[...].astype(out_ref.dtype)


def _combine_staged(below2d, skip2d, out_dtype, vmem_budget_bytes):
    b, f1 = below2d.shape
    _, f2 = skip2d.shape
    fo = f1 + f2

    row_bytes = (f1 * _itemsize(below2d.dtype)
                 + f2 * _itemsize(skip2d.dtype)
                 + fo * _itemsize(out_dtype))
    mult = _sublane_multiple(below2d.dtype, skip2d.dtype, out_dtype)

    # Largest batch block that fits the per-step budget, rounded to the sublane
    # multiple whenever the block is smaller than the full batch (the (8,128)
    # rule: second-to-last block dim must be a multiple of 8/16/32 or == b).
    bb_budget = max(1, vmem_budget_bytes // max(row_bytes, 1))
    if bb_budget >= b:
        bb = b
    else:
        bb = max(mult, _round_down(bb_budget, mult))
    # Prefer >= 4 grid steps (DMA/compute overlap + both v7x TensorCores) when
    # the batch is large enough to split into sublane-aligned blocks.
    if bb >= b and b >= 4 * mult:
        bb = min(bb, _round_up(pl.cdiv(b, 4), mult))
    grid = (pl.cdiv(b, bb),)

    # Derive the compiler VMEM limit from the real double-buffered footprint
    # (+25% headroom), floored at the previously-working 32 MiB and capped
    # safely below the 128 MiB parts.  Default budget keeps this < 64 MiB (v7x).
    footprint = 2 * bb * row_bytes
    vmem_limit = int(min(max(footprint * 5 // 4 + (1 << 20), 32 * 1024 * 1024),
                         100 * 1024 * 1024))

    total_bytes = (below2d.size * _itemsize(below2d.dtype)
                   + skip2d.size * _itemsize(skip2d.dtype)
                   + b * fo * _itemsize(out_dtype))

    # NOTE: if f1 is not a multiple of 128 the second slab's store starts off a
    # lane boundary (masked stores); acceptable for this rare mixed-dtype path —
    # the matched-dtype DMA path has no such constraint.
    return pl.pallas_call(
        _staged_concat_kernel,
        out_shape=jax.ShapeDtypeStruct((b, fo), out_dtype),
        grid=grid,
        in_specs=[
            pl.BlockSpec((bb, f1), lambda i: (i, 0)),
            pl.BlockSpec((bb, f2), lambda i: (i, 0)),
        ],
        out_specs=pl.BlockSpec((bb, fo), lambda i: (i, 0)),
        compiler_params=pltpu.CompilerParams(
            dimension_semantics=("parallel",),
            vmem_limit_bytes=vmem_limit,
        ),
        cost_estimate=pl.CostEstimate(flops=0, transcendentals=0,
                                      bytes_accessed=int(total_bytes)),
    )(below2d, skip2d)


# ---------------------------------------------------------------------------
# Public wrapper: torch.cat((from_below, from_skip), dim=1) for NCHW tensors.
# ---------------------------------------------------------------------------
def combine_block(from_below, from_skip, *, vmem_budget_bytes=16 * 1024 * 1024):
    assert from_below.ndim == 4 and from_skip.ndim == 4
    b, c1, h, w = from_below.shape
    b2, c2, h2, w2 = from_skip.shape
    assert (b, h, w) == (b2, h2, w2), "non-channel dims must match"

    out_dtype = jnp.promote_types(from_below.dtype, from_skip.dtype)
    f1 = c1 * h * w
    f2 = c2 * h * w

    # Free row-major reshapes: channel concat in NCHW == concat of flattened
    # (C*H*W) slabs per batch row.
    below2d = from_below.reshape(b, f1)
    skip2d = from_skip.reshape(b, f2)

    same_dtype = (from_below.dtype == out_dtype) and (from_skip.dtype == out_dtype)
    if same_dtype:
        out2d = _combine_dma(below2d, skip2d, out_dtype)
    else:
        row_bytes = (f1 * _itemsize(from_below.dtype)
                     + f2 * _itemsize(from_skip.dtype)
                     + (f1 + f2) * _itemsize(out_dtype))
        mult = _sublane_multiple(from_below.dtype, from_skip.dtype, out_dtype)
        min_rows = b if b <= mult else mult
        if row_bytes * min_rows > vmem_budget_bytes:
            # Even a minimal sublane-aligned block would blow the VMEM budget:
            # cast up front (XLA) and use the pure-DMA concat so compilation
            # cannot fail for huge C*H*W rows.
            # TODO(synk): fused feature-tiled cast+concat kernel for this case.
            out2d = _combine_dma(below2d.astype(out_dtype),
                                 skip2d.astype(out_dtype), out_dtype)
        else:
            out2d = _combine_staged(below2d, skip2d, out_dtype, vmem_budget_bytes)

    return out2d.reshape(b, c1 + c2, h, w)


if __name__ == "__main__":
    key = jax.random.PRNGKey(0)
    k1, k2 = jax.random.split(key)

    # Small NCHW inputs consistent with the module's forward.
    from_below = jax.random.normal(k1, (2, 4, 16, 16), dtype=jnp.float32)
    from_skip = jax.random.normal(k2, (2, 4, 16, 16), dtype=jnp.float32)

    # Matched dtypes -> pure HBM->HBM DMA concat path.
    out = jax.block_until_ready(combine_block(from_below, from_skip))
    ref = jnp.concatenate((from_below, from_skip), axis=1)
    assert out.shape == (2, 8, 16, 16)
    assert jnp.array_equal(out, ref), "mismatch vs jnp.concatenate reference"

    # Mixed dtypes -> VMEM-staged kernel with in-kernel VPU cast.
    below_bf16 = from_below.astype(jnp.bfloat16)
    out_mixed = jax.block_until_ready(combine_block(below_bf16, from_skip))
    ref_mixed = jnp.concatenate((below_bf16, from_skip), axis=1)
    assert out_mixed.dtype == ref_mixed.dtype
    assert jnp.array_equal(out_mixed, ref_mixed), "mixed-dtype mismatch"

    # Larger batch with a deliberately tiny budget -> multi-step batch-blocked
    # grid with sublane-rounded bb (exercises bb=16, grid=(4,)).
    kb1, kb2 = jax.random.split(jax.random.PRNGKey(1))
    big_below = jax.random.normal(kb1, (64, 4, 16, 16), dtype=jnp.bfloat16)
    big_skip = jax.random.normal(kb2, (64, 4, 16, 16), dtype=jnp.float32)
    out_big = jax.block_until_ready(
        combine_block(big_below, big_skip, vmem_budget_bytes=256 * 1024))
    ref_big = jnp.concatenate((big_below.astype(jnp.float32), big_skip), axis=1)
    assert jnp.array_equal(out_big, ref_big), "blocked-grid mismatch"

    print("KERNEL_OK")
</pallas_src>

<mosaic_0001>
module attributes {stable_mosaic.version = 11 : i64} {
  func.func @_dma_concat_kernel(%arg0: memref<2x1024xf32, #tpu.memory_space<any>>, %arg1: memref<2x1024xf32, #tpu.memory_space<any>>, %arg2: memref<2x2048xf32, #tpu.memory_space<any>>, %arg3: memref<2x!tpu.dma_semaphore, #tpu.memory_space<semaphore_mem>>) attributes {dimension_semantics = [], scalar_prefetch = 0 : i64, scratch_operands = 1 : i64, tpu.core_type = #tpu.core_type<tc>} {
    %c0_i32 = arith.constant 0 : i32
    %c0_i32_0 = arith.constant 0 : i32
    %c0_i32_1 = arith.constant 0 : i32
    %0 = tpu.memref_slice %arg2[%c0_i32_0, %c0_i32_1] : memref<2x2048xf32, #tpu.memory_space<any>> -> memref<2x1024xf32, #tpu.memory_space<any>>
    %1 = tpu.memref_slice %arg3[%c0_i32] : memref<2x!tpu.dma_semaphore, #tpu.memory_space<semaphore_mem>> -> memref<1x!tpu.dma_semaphore, #tpu.memory_space<semaphore_mem>>
    %2 = tpu.memref_squeeze %1 : memref<1x!tpu.dma_semaphore, #tpu.memory_space<semaphore_mem>> -> memref<!tpu.dma_semaphore, #tpu.memory_space<semaphore_mem>>
    tpu.enqueue_dma source(%arg0 : memref<2x1024xf32, #tpu.memory_space<any>>) target(%0 : memref<2x1024xf32, #tpu.memory_space<any>>) target_semaphore(%2 : memref<!tpu.dma_semaphore, #tpu.memory_space<semaphore_mem>>)
    %c1_i32 = arith.constant 1 : i32
    %c0_i32_2 = arith.constant 0 : i32
    %c1024_i32 = arith.constant 1024 : i32
    %3 = tpu.memref_slice %arg2[%c0_i32_2, %c1024_i32] : memref<2x2048xf32, #tpu.memory_space<any>> -> memref<2x1024xf32, #tpu.memory_space<any>>
    %4 = tpu.memref_slice %arg3[%c1_i32] : memref<2x!tpu.dma_semaphore, #tpu.memory_space<semaphore_mem>> -> memref<1x!tpu.dma_semaphore, #tpu.memory_space<semaphore_mem>>
    %5 = tpu.memref_squeeze %4 : memref<1x!tpu.dma_semaphore, #tpu.memory_space<semaphore_mem>> -> memref<!tpu.dma_semaphore, #tpu.memory_space<semaphore_mem>>
    tpu.enqueue_dma source(%arg1 : memref<2x1024xf32, #tpu.memory_space<any>>) target(%3 : memref<2x1024xf32, #tpu.memory_space<any>>) target_semaphore(%5 : memref<!tpu.dma_semaphore, #tpu.memory_space<semaphore_mem>>)
    %c0_i32_3 = arith.constant 0 : i32
    %c0_i32_4 = arith.constant 0 : i32
    %c0_i32_5 = arith.constant 0 : i32
    %6 = tpu.memref_slice %arg2[%c0_i32_4, %c0_i32_5] : memref<2x2048xf32, #tpu.memory_space<any>> -> memref<2x1024xf32, #tpu.memory_space<any>>
    %7 = tpu.memref_slice %arg3[%c0_i32_3] : memref<2x!tpu.dma_semaphore, #tpu.memory_space<semaphore_mem>> -> memref<1x!tpu.dma_semaphore, #tpu.memory_space<semaphore_mem>>
    %8 = tpu.memref_squeeze %7 : memref<1x!tpu.dma_semaphore, #tpu.memory_space<semaphore_mem>> -> memref<!tpu.dma_semaphore, #tpu.memory_space<semaphore_mem>>
    tpu.wait_dma2 semaphore(%8 : memref<!tpu.dma_semaphore, #tpu.memory_space<semaphore_mem>>) src(%arg0 : memref<2x1024xf32, #tpu.memory_space<any>>) dst(%6 : memref<2x1024xf32, #tpu.memory_space<any>>)
    %c1_i32_6 = arith.constant 1 : i32
    %c0_i32_7 = arith.constant 0 : i32
    %c1024_i32_8 = arith.constant 1024 : i32
    %9 = tpu.memref_slice %arg2[%c0_i32_7, %c1024_i32_8] : memref<2x2048xf32, #tpu.memory_space<any>> -> memref<2x1024xf32, #tpu.memory_space<any>>
    %10 = tpu.memref_slice %arg3[%c1_i32_6] : memref<2x!tpu.dma_semaphore, #tpu.memory_space<semaphore_mem>> -> memref<1x!tpu.dma_semaphore, #tpu.memory_space<semaphore_mem>>
    %11 = tpu.memref_squeeze %10 : memref<1x!tpu.dma_semaphore, #tpu.memory_space<semaphore_mem>> -> memref<!tpu.dma_semaphore, #tpu.memory_space<semaphore_mem>>
    tpu.wait_dma2 semaphore(%11 : memref<!tpu.dma_semaphore, #tpu.memory_space<semaphore_mem>>) src(%arg1 : memref<2x1024xf32, #tpu.memory_space<any>>) dst(%9 : memref<2x1024xf32, #tpu.memory_space<any>>)
    return
  }
}

</mosaic_0001>

<bundles_post_ra>
// kernel: tpu_custom_call.1
= control target key start
LH: loop header
LB: loop body
LE: loop exit
PB: predicated region body
PF: predicated region fallthrough
CT: control target
= control target key end

     0   :  { %s61_s18 = smov [#allocation2]   ;;  %s62_s19 = smov [#allocation3]   ;;  %s93_s0 = inlined_call_operand.hbm [shape: f32[2,1024], index: 0, kind: input, shape index: {}]   ;;  %s94_s2 = inlined_call_operand.hbm [shape: f32[2,2048], index: 2, kind: output, shape index: {}]   ;;  %s95_s1 = inlined_call_operand.hbm [shape: f32[2,1024], index: 1, kind: input, shape index: {}]  }
   0x1   :  { %s11_s11 = sshll.u32 %s93_s0, 4  ;;  %s13_s14 = sshll.u32 %s94_s2, 4  ;;  %s12_s11 = int_to_ptr.hbm [resolvable:$true] %s11_s11  ;;  %s14_s14 = int_to_ptr.hbm [resolvable:$true] %s13_s14 }
   0x2   :  { %s18_s17 = scalar_lea.hbm %s94_s2, 16  ;;  %s63_s20 = smov 0  }
   0x3   :  { %17 = dma.general %s12_s11, 256, %s14_s14, %s61_s18, %s62_s19, [#allocation4], %s63_s20, 0  }
   0x4   :  { %s26_s21 = sshll.u32 %s18_s17, 4  ;;  %s24_s24 = sshll.u32 %s95_s1, 4  ;;  %s25_s24 = int_to_ptr.hbm [resolvable:$true] %s24_s24  ;;  %s27_s21 = int_to_ptr.hbm [resolvable:$true] %s26_s21 }
   0x5   :  { %s64_s0 = smov [#allocation2 + $0x1]   ;;  %s65_s25 = smov [#allocation5]  }
   0x6   :  { %30 = dma.general %s25_s24, 256, %s27_s21, %s64_s0, %s65_s25, [#allocation6], %s63_s20, 0  }
   0x7   :  { %57 = dma.done.wait [#allocation2], 256 }
   0x8   :  { %58 = vsyncadd [#allocation2], 4294967040 }
   0x9   :  { %59 = dma.done.wait [#allocation2 + $0x1], 256 }
   0xa   :  { %60 = vsyncadd [#allocation2 + $0x1], 4294967040 }
   0xb   :  { %37 = vsyncmov [#allocation2] }
   0xe   :  { %s38_s2 = vpop.sfrf %37 }
   0xf   :  { %p50_p0 = scmp.ne.s32.totalorder %s38_s2, 0 }
  0x11   :  { %42 = shalt.err (%p50_p0)  }
  0x12   :  { %44 = vsyncmov [#allocation2 + $0x1] }
  0x15   :  { %s45_s26 = vpop.sfrf %44 }
  0x16   :  { %p51_p1 = scmp.ne.s32.totalorder %s45_s26, 0 }
  0x18   :  { %49 = shalt.err (%p51_p1)  }

</bundles_post_ra>
